<compile_context>
chip_gen: v6e
topology: v6e:2x2x1
jax: 0.10.0
libtpu: 0.0.40
codegen_flags: <defaults>
</compile_context>

<pallas_src>
import jax
import jax.numpy as jnp
from jax.experimental import pallas as pl
from jax.experimental.pallas import tpu as pltpu


# ---------------------------------------------------------------------------
# Kernels
# ---------------------------------------------------------------------------
def _ffn_resident_kernel(x_ref, w1_ref, b1_ref, w2_ref, b2_ref, o_ref):
    """Weights fully VMEM-resident: 1-D grid over token tiles, no reduction axis.

    x_ref : (TT, d_model)   token tile (native dtype, cast to bf16 in-kernel)
    w1_ref: (d_model, d_ff) full W1 (bf16), constant block index -> DMAed once
    b1_ref: (1, d_ff)       full b1 (f32)
    w2_ref: (d_ff, d_model) full W2 (bf16), constant block index -> DMAed once
    b2_ref: (1, d_model)    b2 (f32)
    """
    h = jnp.dot(x_ref[...].astype(w1_ref.dtype), w1_ref[...],
                preferred_element_type=jnp.float32)
    h = jnp.maximum(h + b1_ref[...], 0.0)
    out = jnp.dot(h.astype(w2_ref.dtype), w2_ref[...],
                  preferred_element_type=jnp.float32) + b2_ref[...]
    o_ref[...] = out.astype(o_ref.dtype)


def _ffn_streaming_kernel(x_ref, w1_ref, b1_ref, w2_ref, b2_ref, o_ref, acc_ref):
    """d_ff streamed: grid = (token_tiles, d_ff_tiles); reduction axis last.

    x_ref : (TT, d_model)   token tile (constant block idx across k)
    w1_ref: (d_model, TF)   W1 column slice (bf16)
    b1_ref: (1, TF)         b1 slice (f32)
    w2_ref: (TF, d_model)   W2 row slice (bf16)
    b2_ref: (1, d_model)    b2 (f32)
    acc_ref: (TT, d_model)  f32 accumulator scratch (resident across k)
    """
    k = pl.program_id(1)

    # First matmul slice: (TT, d_model) @ (d_model, TF) -> f32 on the MXU.
    h = jnp.dot(x_ref[...].astype(w1_ref.dtype), w1_ref[...],
                preferred_element_type=jnp.float32)
    # Bias + ReLU in one f32 pass over the (TT, TF) slab.
    h = jnp.maximum(h + b1_ref[...], 0.0)
    # Second matmul slice: partial contribution to the output tile.
    partial = jnp.dot(h.astype(w2_ref.dtype), w2_ref[...],
                      preferred_element_type=jnp.float32)

    @pl.when(k == 0)
    def _init():
        # Fold b2 into the first partial (no separate broadcast-fill pass).
        acc_ref[...] = partial + b2_ref[...]

    @pl.when(k > 0)
    def _accumulate():
        acc_ref[...] += partial

    @pl.when(k == pl.num_programs(1) - 1)
    def _finalize():
        o_ref[...] = acc_ref[...].astype(o_ref.dtype)


# ---------------------------------------------------------------------------
# Wrapper
# ---------------------------------------------------------------------------
def _round_up(n, m):
    return ((n + m - 1) // m) * m


def _vmem_limit_bytes():
    """Generation-aware VMEM budget: 80% of physical, leaving Mosaic headroom."""
    try:
        phys = int(pltpu.get_tpu_info().vmem_capacity_bytes)
    except Exception:
        phys = 64 * 1024 * 1024  # conservative (v7x-sized) fallback
    return max(16 * 1024 * 1024, int(phys * 0.8))


def positionwise_feed_forward(x, w1, b1, w2, b2, *,
                              token_tile=512, ff_tile=512,
                              compute_dtype=jnp.bfloat16,
                              force_streaming=False):
    """FFN(x) = max(0, x @ W1 + b1) @ W2 + b2.

    x : (B, S, d_model)
    w1: (d_model, d_ff), b1: (d_ff,)
    w2: (d_ff, d_model), b2: (d_model,)

    Weights are stored as (in, out) so the kernel computes x @ W; PyTorch's
    nn.Linear stores (out, in) and does x @ W.T -- same math.
    """
    B, S, d_model = x.shape
    d_ff = w1.shape[1]
    tokens = B * S
    out_dtype = x.dtype

    x_b = jnp.dtype(x.dtype).itemsize
    o_b = jnp.dtype(out_dtype).itemsize
    cd_b = jnp.dtype(compute_dtype).itemsize

    vmem_budget = _vmem_limit_bytes()

    # --- token tiling: big tile (MXU M-fill), padded token count ---
    token_tile = max(8, _round_up(token_tile, 8))
    tt = min(token_tile, _round_up(tokens, 8))

    # --- VMEM working-set estimators (conservative: double-buffer everything) ---
    def resident_vmem(tt_):
        return (2 * tt_ * d_model * (x_b + o_b)            # x / out tiles
                + 2 * 2 * d_model * d_ff * cd_b            # W1 + W2 buffers
                + 2 * (d_ff + d_model) * 4                 # biases
                + tt_ * d_ff * (4 + cd_b))                 # hidden slab (f32 + cast)

    def stream_vmem(tt_, tf_):
        return (2 * tt_ * d_model * (x_b + o_b)
                + 2 * d_model * tf_ * cd_b                 # W1 slice buffers
                + 2 * tf_ * d_model * cd_b                 # W2 slice buffers
                + 2 * (tf_ + d_model) * 4                  # bias slices
                + tt_ * d_model * 4                        # f32 accumulator scratch
                + tt_ * tf_ * (4 + cd_b))                  # hidden slab

    use_resident = (not force_streaming) and (resident_vmem(tt) <= vmem_budget)

    w1c = w1.astype(compute_dtype)
    w2c = w2.astype(compute_dtype)
    b1f = b1.astype(jnp.float32)
    b2_2d = b2.reshape(1, d_model).astype(jnp.float32)

    if use_resident:
        d_ff_p = d_ff
        tf = d_ff
    else:
        # Pad d_ff to a multiple of 128. Zero-padded hidden units are exact:
        # relu(x @ 0 + 0) = 0 and the matching W2 rows are zero.
        d_ff_p = _round_up(d_ff, 128)
        ff_tile = max(128, (ff_tile // 128) * 128)
        tf = 128
        cand = 128
        while cand <= min(ff_tile, d_ff_p):
            if d_ff_p % cand == 0:
                tf = cand
            cand += 128
        # Shrink the token tile if the streaming working set exceeds the budget.
        while tt > 256 and stream_vmem(tt, tf) > vmem_budget:
            tt = max(256, _round_up(tt // 2, 8))
        if d_ff_p != d_ff:
            w1c = jnp.pad(w1c, ((0, 0), (0, d_ff_p - d_ff)))
            w2c = jnp.pad(w2c, ((0, d_ff_p - d_ff), (0, 0)))
            b1f = jnp.pad(b1f, (0, d_ff_p - d_ff))

    b1_2d = b1f.reshape(1, d_ff_p)

    tokens_p = _round_up(tokens, tt)
    x2d = x.reshape(tokens, d_model)           # native dtype; cast happens in-kernel
    if tokens_p != tokens:
        x2d = jnp.pad(x2d, ((0, tokens_p - tokens), (0, 0)))

    num_token_tiles = tokens_p // tt

    # Advisory cost hint reflecting actual HBM traffic of the chosen layout.
    flops = 4 * tokens_p * d_model * d_ff_p
    weight_bytes = 2 * d_model * d_ff_p * cd_b + (d_ff_p + d_model) * 4
    weight_reads = 1 if use_resident else num_token_tiles
    bytes_accessed = int(tokens_p * d_model * (x_b + o_b)
                         + weight_reads * weight_bytes)
    cost = pl.CostEstimate(flops=flops, transcendentals=0,
                           bytes_accessed=bytes_accessed)

    cparams = pltpu.CompilerParams(
        dimension_semantics=("parallel",) if use_resident
        else ("parallel", "arbitrary"),
        vmem_limit_bytes=vmem_budget,
    )

    if use_resident:
        out2d = pl.pallas_call(
            _ffn_resident_kernel,
            out_shape=jax.ShapeDtypeStruct((tokens_p, d_model), out_dtype),
            grid_spec=pltpu.PrefetchScalarGridSpec(
                num_scalar_prefetch=0,
                grid=(num_token_tiles,),
                in_specs=[
                    # x tile streams over i.
                    pl.BlockSpec((tt, d_model), lambda i: (i, 0)),
                    # Weights/biases: constant block index -> fetched once, reused.
                    pl.BlockSpec((d_model, d_ff_p), lambda i: (0, 0)),
                    pl.BlockSpec((1, d_ff_p), lambda i: (0, 0)),
                    pl.BlockSpec((d_ff_p, d_model), lambda i: (0, 0)),
                    pl.BlockSpec((1, d_model), lambda i: (0, 0)),
                ],
                out_specs=pl.BlockSpec((tt, d_model), lambda i: (i, 0)),
            ),
            compiler_params=cparams,
            cost_estimate=cost,
        )(x2d, w1c, b1_2d, w2c, b2_2d)
    else:
        out2d = pl.pallas_call(
            _ffn_streaming_kernel,
            out_shape=jax.ShapeDtypeStruct((tokens_p, d_model), out_dtype),
            grid_spec=pltpu.PrefetchScalarGridSpec(
                num_scalar_prefetch=0,
                grid=(num_token_tiles, d_ff_p // tf),
                in_specs=[
                    # x tile: constant block index across k -> fetched once per i.
                    pl.BlockSpec((tt, d_model), lambda i, k: (i, 0)),
                    # W1 / b1 / W2 slices stream along the reduction axis
                    # (double-buffered: next slice prefetches under the matmul).
                    pl.BlockSpec((d_model, tf), lambda i, k: (0, k)),
                    pl.BlockSpec((1, tf), lambda i, k: (0, k)),
                    pl.BlockSpec((tf, d_model), lambda i, k: (k, 0)),
                    pl.BlockSpec((1, d_model), lambda i, k: (0, 0)),
                ],
                out_specs=pl.BlockSpec((tt, d_model), lambda i, k: (i, 0)),
                scratch_shapes=[pltpu.VMEM((tt, d_model), jnp.float32)],
            ),
            compiler_params=cparams,
            cost_estimate=cost,
        )(x2d, w1c, b1_2d, w2c, b2_2d)

    return out2d[:tokens].reshape(B, S, d_model)


# ---------------------------------------------------------------------------
# Self-test
# ---------------------------------------------------------------------------
if __name__ == "__main__":
    # Small shapes consistent with the module: batch=2, seq=8, d_model=32, d_ff=256.
    B, S, d_model, d_ff = 2, 8, 32, 256

    key = jax.random.PRNGKey(0)
    kx, kw1, kb1, kw2, kb2 = jax.random.split(key, 5)

    x = jax.random.normal(kx, (B, S, d_model), dtype=jnp.float32)
    w1 = jax.random.normal(kw1, (d_model, d_ff), dtype=jnp.float32) * (1.0 / d_model ** 0.5)
    b1 = jax.random.normal(kb1, (d_ff,), dtype=jnp.float32) * 0.01
    w2 = jax.random.normal(kw2, (d_ff, d_model), dtype=jnp.float32) * (1.0 / d_ff ** 0.5)
    b2 = jax.random.normal(kb2, (d_model,), dtype=jnp.float32) * 0.01

    # Reference 1: same bf16-in / f32-accumulate recipe as the kernel (tight check).
    cd = jnp.bfloat16
    h_ref = jnp.maximum(
        jnp.dot(x.astype(cd), w1.astype(cd), preferred_element_type=jnp.float32) + b1, 0.0)
    ref_bf16 = jnp.dot(h_ref.astype(cd), w2.astype(cd),
                       preferred_element_type=jnp.float32) + b2
    # Reference 2: pure-f32 module math (loose check for the bf16 MXU path).
    ref_f32 = jnp.maximum(x @ w1 + b1, 0.0) @ w2 + b2

    # (a) weight-resident fast path (chosen automatically at these small shapes).
    out_res = jax.block_until_ready(positionwise_feed_forward(x, w1, b1, w2, b2))
    assert out_res.shape == (B, S, d_model)
    assert out_res.dtype == x.dtype
    assert jnp.allclose(out_res, ref_bf16, atol=2e-3, rtol=2e-3), \
        float(jnp.max(jnp.abs(out_res - ref_bf16)))
    assert jnp.allclose(out_res, ref_f32, atol=5e-2, rtol=5e-2), \
        float(jnp.max(jnp.abs(out_res - ref_f32)))

    # (b) d_ff-streaming path (ff_tile=128 -> 2 reduction steps) exercises the
    #     resident f32 accumulator + init/finalize logic.
    out_str = jax.block_until_ready(
        positionwise_feed_forward(x, w1, b1, w2, b2,
                                  ff_tile=128, force_streaming=True))
    assert out_str.shape == (B, S, d_model)
    assert out_str.dtype == x.dtype
    assert jnp.allclose(out_str, ref_bf16, atol=2e-3, rtol=2e-3), \
        float(jnp.max(jnp.abs(out_str - ref_bf16)))
    assert jnp.allclose(out_str, ref_f32, atol=5e-2, rtol=5e-2), \
        float(jnp.max(jnp.abs(out_str - ref_f32)))

    print("KERNEL_OK")
</pallas_src>

<mosaic_0001>
module attributes {stable_mosaic.version = 11 : i64} {
  func.func @_ffn_resident_kernel(%arg0: i32, %arg1: memref<16x32xf32, #tpu.memory_space<vmem>>, %arg2: memref<32x256xbf16, #tpu.memory_space<vmem>>, %arg3: memref<1x256xf32, #tpu.memory_space<vmem>>, %arg4: memref<256x32xbf16, #tpu.memory_space<vmem>>, %arg5: memref<1x32xf32, #tpu.memory_space<vmem>>, %arg6: memref<16x32xf32, #tpu.memory_space<vmem>>) attributes {dimension_semantics = [#tpu.dimension_semantics<parallel>], iteration_bounds = array<i64: 1>, scalar_prefetch = 0 : i64, scratch_operands = 0 : i64, tpu.core_type = #tpu.core_type<tc>, window_params = [{transform_indices = @transform_0, window_bounds = array<i64: 16, 32>}, {pipeline_mode = #tpu.pipeline_mode<synchronous>, transform_indices = @transform_1, window_bounds = array<i64: 32, 256>}, {pipeline_mode = #tpu.pipeline_mode<synchronous>, transform_indices = @transform_2, window_bounds = array<i64: 1, 256>}, {pipeline_mode = #tpu.pipeline_mode<synchronous>, transform_indices = @transform_3, window_bounds = array<i64: 256, 32>}, {pipeline_mode = #tpu.pipeline_mode<synchronous>, transform_indices = @transform_4, window_bounds = array<i64: 1, 32>}, {transform_indices = @transform_5, window_bounds = array<i64: 16, 32>}]} {
    %c0 = arith.constant 0 : index
    %c0_0 = arith.constant 0 : index
    %0 = vector.load %arg1[%c0, %c0_0] : memref<16x32xf32, #tpu.memory_space<vmem>>, vector<16x32xf32>
    %1 = arith.truncf %0 : vector<16x32xf32> to vector<16x32xbf16>
    %c0_1 = arith.constant 0 : index
    %c0_2 = arith.constant 0 : index
    %2 = vector.load %arg2[%c0_1, %c0_2] : memref<32x256xbf16, #tpu.memory_space<vmem>>, vector<32x256xbf16>
    %cst = arith.constant dense<0.000000e+00> : vector<16x256xf32>
    %3 = tpu.matmul %1, %2, %cst {dimension_numbers = #tpu.dot_dimension_numbers<[1], [0], [0], [1], [0, 0, 1, 1], [], []>} : vector<16x32xbf16>, vector<32x256xbf16>, vector<16x256xf32> -> vector<16x256xf32>
    %c0_3 = arith.constant 0 : index
    %c0_4 = arith.constant 0 : index
    %4 = vector.load %arg3[%c0_3, %c0_4] : memref<1x256xf32, #tpu.memory_space<vmem>>, vector<1x256xf32>
    %5 = vector.broadcast %4 : vector<1x256xf32> to vector<16x256xf32>
    %6 = arith.addf %3, %5 : vector<16x256xf32>
    %cst_5 = arith.constant 0.000000e+00 : f32
    %7 = vector.broadcast %cst_5 : f32 to vector<16x256xf32>
    %8 = arith.maximumf %6, %7 : vector<16x256xf32>
    %9 = arith.truncf %8 : vector<16x256xf32> to vector<16x256xbf16>
    %c0_6 = arith.constant 0 : index
    %c0_7 = arith.constant 0 : index
    %10 = vector.load %arg4[%c0_6, %c0_7] : memref<256x32xbf16, #tpu.memory_space<vmem>>, vector<256x32xbf16>
    %cst_8 = arith.constant dense<0.000000e+00> : vector<16x32xf32>
    %11 = tpu.matmul %9, %10, %cst_8 {dimension_numbers = #tpu.dot_dimension_numbers<[1], [0], [0], [1], [0, 0, 1, 1], [], []>} : vector<16x256xbf16>, vector<256x32xbf16>, vector<16x32xf32> -> vector<16x32xf32>
    %c0_9 = arith.constant 0 : index
    %c0_10 = arith.constant 0 : index
    %12 = vector.load %arg5[%c0_9, %c0_10] : memref<1x32xf32, #tpu.memory_space<vmem>>, vector<1x32xf32>
    %13 = vector.broadcast %12 : vector<1x32xf32> to vector<16x32xf32>
    %14 = arith.addf %11, %13 : vector<16x32xf32>
    %c0_11 = arith.constant 0 : index
    %c0_12 = arith.constant 0 : index
    %15 = vector.load %arg6[%c0_11, %c0_12] : memref<16x32xf32, #tpu.memory_space<vmem>>, vector<16x32xf32>
    tpu.vector_store %arg6[%c0_11, %c0_12], %14 {strides = array<i32>} : memref<16x32xf32, #tpu.memory_space<vmem>>, vector<16x32xf32>,
    return
  }
  func.func @transform_0(%arg0: i32) -> (i32, i32) {
    %c0_i32 = arith.constant 0 : i32
    %c0_i32_0 = arith.constant 0 : i32
    return %arg0, %c0_i32 : i32, i32
  }
  func.func @transform_1(%arg0: i32) -> (i32, i32) {
    %c0_i32 = arith.constant 0 : i32
    %c0_i32_0 = arith.constant 0 : i32
    %c0_i32_1 = arith.constant 0 : i32
    return %c0_i32, %c0_i32_0 : i32, i32
  }
  func.func @transform_2(%arg0: i32) -> (i32, i32) {
    %c0_i32 = arith.constant 0 : i32
    %c0_i32_0 = arith.constant 0 : i32
    %c0_i32_1 = arith.constant 0 : i32
    return %c0_i32, %c0_i32_0 : i32, i32
  }
  func.func @transform_3(%arg0: i32) -> (i32, i32) {
    %c0_i32 = arith.constant 0 : i32
    %c0_i32_0 = arith.constant 0 : i32
    %c0_i32_1 = arith.constant 0 : i32
    return %c0_i32, %c0_i32_0 : i32, i32
  }
  func.func @transform_4(%arg0: i32) -> (i32, i32) {
    %c0_i32 = arith.constant 0 : i32
    %c0_i32_0 = arith.constant 0 : i32
    %c0_i32_1 = arith.constant 0 : i32
    return %c0_i32, %c0_i32_0 : i32, i32
  }
  func.func @transform_5(%arg0: i32) -> (i32, i32) {
    %c0_i32 = arith.constant 0 : i32
    %c0_i32_0 = arith.constant 0 : i32
    return %arg0, %c0_i32 : i32, i32
  }
}

</mosaic_0001>

<bundles_post_ra>
// kernel: tpu_custom_call.1
= control target key start
LH: loop header
LB: loop body
LE: loop exit
PB: predicated region body
PF: predicated region fallthrough
CT: control target
= control target key end

     0   :  { %v400_v2 = vmov 0   ;;  %vm61_vm0 = vcmask 261120   ;;  %s512_s0 = inlined_call_operand.vmem [shape: f32[16,32], index: 0, kind: input, shape index: {}]   ;;  %s513_s1 = inlined_call_operand.vmem [shape: bf16[32,256], index: 1, kind: input, shape index: {}]   ;;  %s514_s2 = inlined_call_operand.vmem [shape: f32[1,256], index: 2, kind: input, shape index: {}]   ;;  %s515_s3 = inlined_call_operand.vmem [shape: bf16[256,32], index: 3, kind: input, shape index: {}]   ;;  %s516_s4 = inlined_call_operand.vmem [shape: f32[1,32], index: 4, kind: input, shape index: {}]   ;;  %s517_s5 = inlined_call_operand.hbm [shape: f32[16,32], index: 5, kind: output, shape index: {}]  }
   0x1   :  { %v356_v0 = vld [vmem:[%s513_s1 + $0x14] ss:$8 sps:$4 sm:$0xff]   ;;  %v358_v1 = vld [vmem:[%s513_s1 + $0x10] ss:$8 sps:$4 sm:$0xff]   ;;  %97 = vmatprep.mubr.bf16.mxu0 %v400_v2  ;;  %v359_v3 = vld [vmem:[%s513_s1 + $0x4] ss:$8 sps:$4 sm:$0xff]  }
   0x2   :  { %77 = vmatprep.subr.bf16.mxu0 %v356_v0  ;;  %v361_v4 = vld [vmem:[%s513_s1] ss:$8 sps:$4 sm:$0xff]   ;;  %v362_v7 = vld [vmem:[%s515_s3 + $0x78] sm:$0xff]   ;;  %v364_v10 = vld [vmem:[%s515_s3 + $0x70] sm:$0xff]  }
   0x3   :  { %v22_v5 = vld [vmem:[%s512_s0] sm:$0xff]  ;;  %78 = vmatpush1.bf16.msra.mxu0 %v358_v1  ;;  %v23_v6 = vld [vmem:[%s512_s0 + $0x8] sm:$0xff]  ;;  %v363_v8 = vld [vmem:[%s515_s3 + $0x38] sm:$0xff]   ;;  %330 = vmatprep.subr.bf16.mxu1 %v362_v7 }
   0x4   :  { %79 = vmatprep.subr.bf16.mxu0 %v359_v3  ;;  %v24_v9 = vpack.c.bf16 %v23_v6, %v22_v5  ;;  %331 = vmatpush3.bf16.msra.mxu1 %v363_v8  ;;  %v365_v11 = vld [vmem:[%s515_s3 + $0x30] sm:$0xff]   ;;  %v366_v12 = vld [vmem:[%s515_s3 + $0x68] sm:$0xff]   ;;  %v368_v14 = vld [vmem:[%s515_s3 + $0x60] sm:$0xff]  }
   0x5   :  { %332 = vmatprep.subr.bf16.mxu1 %v364_v10  ;;  %v367_v13 = vld [vmem:[%s515_s3 + $0x28] sm:$0xff]   ;;  %v369_v15 = vld [vmem:[%s515_s3 + $0x20] sm:$0xff]   ;;  %v370_v16 = vld [vmem:[%s515_s3 + $0x58] sm:$0xff]  }
   0x7   :  { %80 = vmatpush1.bf16.msra.mxu0 %v361_v4 }
   0x8   :  { %333 = vmatpush3.bf16.msra.mxu1 %v365_v11 }
   0x9   :  { %334 = vmatprep.subr.bf16.mxu1 %v366_v12 }
   0xa   :  { %312 = vmatmul.mubr.msk.bf16.vlgmr.msra.gmra.mxu0 %vm61_vm0, %v24_v9 }
   0xc   :  { %335 = vmatpush3.bf16.msra.mxu1 %v367_v13 }
   0xd   :  { %336 = vmatprep.subr.bf16.mxu1 %v368_v14 }
   0xe   :  { %10 = vsyncpa [#allocation3], 0  ;;  %v371_v17 = vld [vmem:[%s515_s3 + $0x18] sm:$0xff]   ;;  %v372_v18 = vld [vmem:[%s515_s3 + $0x50] sm:$0xff]   ;;  %v31_v24 = vlaneseq  ;;  %s401_s0 = smov [#allocation2]  }
   0xf   :  { %v373_v19 = vld [vmem:[%s515_s3 + $0x10] sm:$0xff]   ;;  %v374_v20 = vld [vmem:[%s515_s3 + $0x48] sm:$0xff]   ;;  %v376_v22 = vld [vmem:[%s515_s3 + $0x40] sm:$0xff]   ;;  %s297_s11 = sshll.u32 %s401_s0, 4  ;;  %s298_s11 = int_to_ptr.vmem [resolvable:$true] %s297_s11 }
  0x10   :  { %337 = vmatpush3.bf16.msra.mxu1 %v369_v15  ;;  %v375_v21 = vld [vmem:[%s515_s3 + $0x8] sm:$0xff]   ;;  %v377_v23 = vld [vmem:[%s515_s3] sm:$0xff]   ;;  %v32_v25 = vshrl.u32 %v31_v24, 7  ;;  %s378_s12 = scalar_lea.vmem %s298_s11, 256  ;;  %p383_p1 = scmp.lt.s32.totalorder %s298_s11, %s298_s11 }
  0x11   :  { %338 = vmatprep.subr.bf16.mxu1 %v370_v16  ;;  %v29_v28 = vld [vmem:[%s514_s2] sm:$0x3]  ;;  %p379_p0 = scmp.ne.s32.totalorder %s298_s11, %s378_s12  ;;  %p384_p2 = scmp.lt.s32.totalorder %s378_s12, %s378_s12 }
  0x12   :  { %v37_v26 = vsub.s32 1, %v32_v25  ;;  %v33_v27 = vsub.s32 0, %v32_v25  ;;  %v313_v46 = vld [vmem:[%s516_s4] ss:$0 sm:$0xff] }
  0x13   :  { %p385_p3 = por %p384_p2, %p383_p1 }
  0x14   :  { %339 = vmatpush3.bf16.msra.mxu1 %v371_v17  ;;  %v38_v30 = vrot.slane %v29_v28, %v37_v26  ;;  %v34_v31 = vrot.slane %v29_v28, %v33_v27 }
  0x15   :  { %340 = vmatprep.subr.bf16.mxu1 %v372_v18  ;;  %p386_p4 = pnand %p385_p3, %p379_p0 }
  0x18   :  { %341 = vmatpush3.bf16.msra.mxu1 %v373_v19 }
  0x19   :  { %342 = vmatprep.subr.bf16.mxu1 %v374_v20 }
  0x1c   :  { %343 = vmatpush3.bf16.msra.mxu1 %v375_v21 }
  0x1d   :  { %344 = vmatprep.subr.bf16.mxu1 %v376_v22 }
  0x20   :  { %345 = vmatpush3.bf16.msra.mxu1 %v377_v23 }
  0xca   :  { %v99_v29 = vpop.f32.mrf.mxu0 }
  0xcb   :  { %v100_v36 = vadd.f32 %v99_v29, %v34_v31 }
  0xcc   :  { %v101_v32 = vpop.f32.mrf.mxu0 }
  0xcd   :  { %v102_v34 = vadd.f32 %v101_v32, %v38_v30  ;;  %v108_v42 = vmax.f32 %v100_v36, 0.0 }
  0xce   :  { %v103_v33 = vpop.f32.mrf.mxu0 }
  0xcf   :  { %v104_v35 = vadd.f32 %v103_v33, %v34_v31  ;;  %v109_v40 = vmax.f32 %v102_v34, 0.0 }
  0xd0   :  { %v105_v37 = vpop.f32.mrf.mxu0 }
  0xd1   :  { %v106_v38 = vadd.f32 %v105_v37, %v38_v30  ;;  %v110_v39 = vmax.f32 %v104_v35, 0.0 }
  0xd3   :  { %v111_v41 = vmax.f32 %v106_v38, 0.0  ;;  %v112_v44 = vpack.c.bf16 %v110_v39, %v108_v42 }
  0xd5   :  { %v113_v43 = vpack.c.bf16 %v111_v41, %v109_v40 }
  0xd7   :  { %281 = vmatprep.mubr.bf16.mxu1 %v113_v43 }
  0xd8   :  { %282 = vmatmul.mubr.bf16.vlgmr.msra.gmra.mxu1 %v112_v44 }
 0x198   :  { %v346_v45 = vpop.f32.mrf.mxu1 }
 0x19a   :  { %v347_v47 = vpop.f32.mrf.mxu1 }
 0x19b   :  { %v348_v48 = vadd.f32 %v347_v47, %v346_v45 }
 0x19c   :  { %v349_v49 = vpop.f32.mrf.mxu1 }
 0x19d   :  { %v284_v50 = vadd.f32 %v348_v48, %v313_v46 }
 0x19e   :  { %v350_v51 = vpop.f32.mrf.mxu1 }
 0x19f   :  { %290 = vst.msk [vmem:[#allocation2] sm:$0xff] %vm61_vm0, %v284_v50  ;;  %v351_v52 = vadd.f32 %v350_v51, %v349_v49 }
 0x1a1   :  { %v287_v53 = vadd.f32 %v351_v52, %v313_v46 }
 0x1a3   :  { %291 = vst.msk [vmem:[#allocation2 + $0x8] sm:$0xff] %vm61_vm0, %v287_v53 }
 0x1a4   :  { %389 = shalt.err (!%p386_p4)
}
 0x1a5   :  { %s402_s4 = smov 128   ;;  %s403_s13 = smov 8  }
 0x1a6   :  { %303 = dma.vmem_to_hbm [thread:$0]  %s298_s11, 256, %s517_s5, [#allocation3], %s402_s4, %s402_s4, %s403_s13  }
 0x1a7   :  { %398 = dma.done.wait [#allocation3], 256  }
 0x1a8   :  { %399 = vsyncadd [#allocation3], 4294967040 }
 0x1a9   :  { %307 = vsyncpa [#allocation3], 1 }

</bundles_post_ra>
